<compile_context>
chip_gen: v6e
topology: v6e:2x2x1
jax: 0.10.0
libtpu: 0.0.40
codegen_flags: <defaults>
</compile_context>

<pallas_src>
import functools

import jax
import jax.numpy as jnp
from jax.experimental import pallas as pl
from jax.experimental.pallas import tpu as pltpu


STATE_DIM = 6
ACTION_DIM = 2
HIDDEN_DIM = 256


def _round_up(n, m):
    return ((n + m - 1) // m) * m


def _choose_batch_tile(batch):
    """Batch tile: fill MXU rows for big batches, minimal padding for small."""
    if batch >= 512:
        return 512
    if batch >= 256:
        return 256
    return _round_up(max(batch, 8), 8)


def _actor_high_kernel(x_ref,
                       w1_ref, b1_ref,
                       w2_ref, b2_ref,
                       w3_ref, b3_ref,
                       w4_ref, b4_ref,
                       wh_ref, bh_ref,
                       out_ref, *, action_dim):
    """One batch tile: 4x (Linear+ReLU) + fused (mean|log_std) head."""
    h = x_ref[...].astype(jnp.float32)

    def linear_relu(h, w_ref, b_ref):
        y = jnp.dot(h, w_ref[...], preferred_element_type=jnp.float32) + b_ref[...]
        return jnp.maximum(y, 0.0)

    h = linear_relu(h, w1_ref, b1_ref)
    h = linear_relu(h, w2_ref, b2_ref)
    h = linear_relu(h, w3_ref, b3_ref)
    h = linear_relu(h, w4_ref, b4_ref)

    # Fused heads: columns [0, action_dim) = mean, [action_dim, 2*action_dim) = log_std.
    y = jnp.dot(h, wh_ref[...], preferred_element_type=jnp.float32) + bh_ref[...]
    col = jax.lax.broadcasted_iota(jnp.int32, y.shape, 1)
    is_log_std = col >= action_dim
    out_ref[...] = jnp.where(is_log_std, jnp.clip(y, -20.0, 2.0), y).astype(out_ref.dtype)


def init_actor_high_params(key, state_dim=STATE_DIM, action_dim=ACTION_DIM,
                           hidden_dim=HIDDEN_DIM):
    """Deterministic parameter init mirroring the PyTorch module's __init__.

    Weights are stored as (in_features, out_features); biases as (1, out_features).
    """
    keys = jax.random.split(key, 12)
    params = {}

    def torch_linear_init(kw, kb, fan_in, fan_out):
        # PyTorch default: kaiming_uniform(a=sqrt(5)) -> U(-1/sqrt(fan_in), 1/sqrt(fan_in))
        bound = 1.0 / jnp.sqrt(jnp.float32(fan_in))
        w = jax.random.uniform(kw, (fan_in, fan_out), jnp.float32, -bound, bound)
        b = jax.random.uniform(kb, (1, fan_out), jnp.float32, -bound, bound)
        return w, b

    dims = [(state_dim, hidden_dim), (hidden_dim, hidden_dim),
            (hidden_dim, hidden_dim), (hidden_dim, hidden_dim)]
    for i, (fin, fout) in enumerate(dims):
        w, b = torch_linear_init(keys[2 * i], keys[2 * i + 1], fin, fout)
        params[f"w{i + 1}"] = w
        params[f"b{i + 1}"] = b

    def xavier_uniform(k, fan_in, fan_out, gain):
        bound = gain * jnp.sqrt(6.0 / jnp.float32(fan_in + fan_out))
        return jax.random.uniform(k, (fan_in, fan_out), jnp.float32, -bound, bound)

    # mean_head: xavier_uniform(gain=0.01), bias = 0.0
    params["wm"] = xavier_uniform(keys[8], hidden_dim, action_dim, 0.01)
    params["bm"] = jnp.zeros((1, action_dim), jnp.float32)
    # log_std_head: xavier_uniform(gain=0.01), bias = -1.0
    params["ws"] = xavier_uniform(keys[9], hidden_dim, action_dim, 0.01)
    params["bs"] = jnp.full((1, action_dim), -1.0, jnp.float32)
    return params


@functools.partial(jax.jit, static_argnames=("action_dim",))
def actor_high_forward(x, params, action_dim=ACTION_DIM):
    if x.ndim == 1:
        x = x[None, :]
    x = x.astype(jnp.float32)
    batch, state_dim = x.shape
    out_dim = 2 * action_dim

    # --- host-side packing / padding (all shape-static under jit) ------------
    # Fuse the two heads into one matmul.
    w_head = jnp.concatenate([params["wm"], params["ws"]], axis=1)   # (H, 2A)
    b_head = jnp.concatenate([params["bm"], params["bs"]], axis=1)   # (1, 2A)

    # Zero-pad the input feature dim (and w1's rows) to a multiple of 8.
    in_pad = _round_up(max(state_dim, 8), 8)
    w1 = params["w1"]
    if in_pad != state_dim:
        x = jnp.pad(x, ((0, 0), (0, in_pad - state_dim)))
        w1 = jnp.pad(w1, ((0, in_pad - w1.shape[0]), (0, 0)))

    # Batch tiling (+ padding to a whole number of tiles).
    tb = _choose_batch_tile(batch)
    b_pad = _round_up(batch, tb)
    if b_pad != batch:
        x = jnp.pad(x, ((0, b_pad - batch), (0, 0)))
    grid = (b_pad // tb,)

    # --- specs ----------------------------------------------------------------
    def resident(arr):
        # Full-array VMEM resident: same block every grid step -> DMA'd once.
        return pl.BlockSpec(arr.shape, lambda i: (0, 0))

    weights = [w1, params["b1"],
               params["w2"], params["b2"],
               params["w3"], params["b3"],
               params["w4"], params["b4"],
               w_head, b_head]

    in_specs = [pl.BlockSpec((tb, in_pad), lambda i: (i, 0))] + [resident(w) for w in weights]
    out_spec = pl.BlockSpec((tb, out_dim), lambda i: (i, 0))

    kernel = functools.partial(_actor_high_kernel, action_dim=action_dim)

    out = pl.pallas_call(
        kernel,
        out_shape=jax.ShapeDtypeStruct((b_pad, out_dim), jnp.float32),
        grid_spec=pltpu.PrefetchScalarGridSpec(
            num_scalar_prefetch=0,
            grid=grid,
            in_specs=in_specs,
            out_specs=out_spec,
        ),
        compiler_params=pltpu.CompilerParams(
            dimension_semantics=("parallel",),
            vmem_limit_bytes=48 * 1024 * 1024,
        ),
    )(x, *weights)

    return out[:batch]


def actor_high_reference(x, params):
    """Pure-JAX reference for correctness checking."""
    if x.ndim == 1:
        x = x[None, :]
    h = x.astype(jnp.float32)
    for i in range(1, 5):
        h = jnp.maximum(h @ params[f"w{i}"] + params[f"b{i}"], 0.0)
    mean = h @ params["wm"] + params["bm"]
    log_std = jnp.clip(h @ params["ws"] + params["bs"], -20.0, 2.0)
    return jnp.concatenate([mean, log_std], axis=-1)


if __name__ == "__main__":
    key = jax.random.PRNGKey(0)
    k_param, k_x, k_x2 = jax.random.split(key, 3)

    params = init_actor_high_params(k_param)

    # Small-batch path (single tile).
    batch = 2
    x = jax.random.normal(k_x, (batch, STATE_DIM), jnp.float32)
    out = jax.block_until_ready(actor_high_forward(x, params))
    ref = actor_high_reference(x, params)
    assert out.shape == (batch, 2 * ACTION_DIM), out.shape
    assert jnp.allclose(out, ref, atol=1e-5, rtol=1e-5), (out, ref)

    # 1-D input path (unsqueeze behavior).
    out1d = jax.block_until_ready(actor_high_forward(x[0], params))
    assert out1d.shape == (1, 2 * ACTION_DIM)
    assert jnp.allclose(out1d, ref[:1], atol=1e-5, rtol=1e-5)

    # Multi-tile grid path (batch > tile, with batch padding/cropping).
    batch2 = 300
    x2 = jax.random.normal(k_x2, (batch2, STATE_DIM), jnp.float32)
    out2 = jax.block_until_ready(actor_high_forward(x2, params))
    ref2 = actor_high_reference(x2, params)
    assert out2.shape == (batch2, 2 * ACTION_DIM), out2.shape
    assert jnp.allclose(out2, ref2, atol=1e-5, rtol=1e-5)

    print("KERNEL_OK")
</pallas_src>

<mosaic_0001>
module attributes {stable_mosaic.version = 11 : i64} {
  func.func @_actor_high_kernel(%arg0: i32, %arg1: memref<8x8xf32, #tpu.memory_space<vmem>>, %arg2: memref<8x256xf32, #tpu.memory_space<vmem>>, %arg3: memref<1x256xf32, #tpu.memory_space<vmem>>, %arg4: memref<256x256xf32, #tpu.memory_space<vmem>>, %arg5: memref<1x256xf32, #tpu.memory_space<vmem>>, %arg6: memref<256x256xf32, #tpu.memory_space<vmem>>, %arg7: memref<1x256xf32, #tpu.memory_space<vmem>>, %arg8: memref<256x256xf32, #tpu.memory_space<vmem>>, %arg9: memref<1x256xf32, #tpu.memory_space<vmem>>, %arg10: memref<256x4xf32, #tpu.memory_space<vmem>>, %arg11: memref<1x4xf32, #tpu.memory_space<vmem>>, %arg12: memref<8x4xf32, #tpu.memory_space<vmem>>) attributes {dimension_semantics = [#tpu.dimension_semantics<parallel>], iteration_bounds = array<i64: 1>, scalar_prefetch = 0 : i64, scratch_operands = 0 : i64, tpu.core_type = #tpu.core_type<tc>, window_params = [{transform_indices = @transform_0, window_bounds = array<i64: 8, 8>}, {pipeline_mode = #tpu.pipeline_mode<synchronous>, transform_indices = @transform_1, window_bounds = array<i64: 8, 256>}, {pipeline_mode = #tpu.pipeline_mode<synchronous>, transform_indices = @transform_2, window_bounds = array<i64: 1, 256>}, {pipeline_mode = #tpu.pipeline_mode<synchronous>, transform_indices = @transform_3, window_bounds = array<i64: 256, 256>}, {pipeline_mode = #tpu.pipeline_mode<synchronous>, transform_indices = @transform_4, window_bounds = array<i64: 1, 256>}, {pipeline_mode = #tpu.pipeline_mode<synchronous>, transform_indices = @transform_5, window_bounds = array<i64: 256, 256>}, {pipeline_mode = #tpu.pipeline_mode<synchronous>, transform_indices = @transform_6, window_bounds = array<i64: 1, 256>}, {pipeline_mode = #tpu.pipeline_mode<synchronous>, transform_indices = @transform_7, window_bounds = array<i64: 256, 256>}, {pipeline_mode = #tpu.pipeline_mode<synchronous>, transform_indices = @transform_8, window_bounds = array<i64: 1, 256>}, {pipeline_mode = #tpu.pipeline_mode<synchronous>, transform_indices = @transform_9, window_bounds = array<i64: 256, 4>}, {pipeline_mode = #tpu.pipeline_mode<synchronous>, transform_indices = @transform_10, window_bounds = array<i64: 1, 4>}, {transform_indices = @transform_11, window_bounds = array<i64: 8, 4>}]} {
    %c0 = arith.constant 0 : index
    %c0_0 = arith.constant 0 : index
    %0 = vector.load %arg1[%c0, %c0_0] : memref<8x8xf32, #tpu.memory_space<vmem>>, vector<8x8xf32>
    %c0_1 = arith.constant 0 : index
    %c0_2 = arith.constant 0 : index
    %1 = vector.load %arg2[%c0_1, %c0_2] : memref<8x256xf32, #tpu.memory_space<vmem>>, vector<8x256xf32>
    %cst = arith.constant dense<0.000000e+00> : vector<8x256xf32>
    %2 = tpu.matmul %0, %1, %cst {dimension_numbers = #tpu.dot_dimension_numbers<[1], [0], [0], [1], [0, 0, 1, 1], [], []>} : vector<8x8xf32>, vector<8x256xf32>, vector<8x256xf32> -> vector<8x256xf32>
    %c0_3 = arith.constant 0 : index
    %c0_4 = arith.constant 0 : index
    %3 = vector.load %arg3[%c0_3, %c0_4] : memref<1x256xf32, #tpu.memory_space<vmem>>, vector<1x256xf32>
    %4 = vector.broadcast %3 : vector<1x256xf32> to vector<8x256xf32>
    %5 = arith.addf %2, %4 : vector<8x256xf32>
    %cst_5 = arith.constant 0.000000e+00 : f32
    %6 = vector.broadcast %cst_5 : f32 to vector<8x256xf32>
    %7 = arith.maximumf %5, %6 : vector<8x256xf32>
    %c0_6 = arith.constant 0 : index
    %c0_7 = arith.constant 0 : index
    %8 = vector.load %arg4[%c0_6, %c0_7] : memref<256x256xf32, #tpu.memory_space<vmem>>, vector<256x256xf32>
    %cst_8 = arith.constant dense<0.000000e+00> : vector<8x256xf32>
    %9 = tpu.matmul %7, %8, %cst_8 {dimension_numbers = #tpu.dot_dimension_numbers<[1], [0], [0], [1], [0, 0, 1, 1], [], []>} : vector<8x256xf32>, vector<256x256xf32>, vector<8x256xf32> -> vector<8x256xf32>
    %c0_9 = arith.constant 0 : index
    %c0_10 = arith.constant 0 : index
    %10 = vector.load %arg5[%c0_9, %c0_10] : memref<1x256xf32, #tpu.memory_space<vmem>>, vector<1x256xf32>
    %11 = vector.broadcast %10 : vector<1x256xf32> to vector<8x256xf32>
    %12 = arith.addf %9, %11 : vector<8x256xf32>
    %cst_11 = arith.constant 0.000000e+00 : f32
    %13 = vector.broadcast %cst_11 : f32 to vector<8x256xf32>
    %14 = arith.maximumf %12, %13 : vector<8x256xf32>
    %c0_12 = arith.constant 0 : index
    %c0_13 = arith.constant 0 : index
    %15 = vector.load %arg6[%c0_12, %c0_13] : memref<256x256xf32, #tpu.memory_space<vmem>>, vector<256x256xf32>
    %cst_14 = arith.constant dense<0.000000e+00> : vector<8x256xf32>
    %16 = tpu.matmul %14, %15, %cst_14 {dimension_numbers = #tpu.dot_dimension_numbers<[1], [0], [0], [1], [0, 0, 1, 1], [], []>} : vector<8x256xf32>, vector<256x256xf32>, vector<8x256xf32> -> vector<8x256xf32>
    %c0_15 = arith.constant 0 : index
    %c0_16 = arith.constant 0 : index
    %17 = vector.load %arg7[%c0_15, %c0_16] : memref<1x256xf32, #tpu.memory_space<vmem>>, vector<1x256xf32>
    %18 = vector.broadcast %17 : vector<1x256xf32> to vector<8x256xf32>
    %19 = arith.addf %16, %18 : vector<8x256xf32>
    %cst_17 = arith.constant 0.000000e+00 : f32
    %20 = vector.broadcast %cst_17 : f32 to vector<8x256xf32>
    %21 = arith.maximumf %19, %20 : vector<8x256xf32>
    %c0_18 = arith.constant 0 : index
    %c0_19 = arith.constant 0 : index
    %22 = vector.load %arg8[%c0_18, %c0_19] : memref<256x256xf32, #tpu.memory_space<vmem>>, vector<256x256xf32>
    %cst_20 = arith.constant dense<0.000000e+00> : vector<8x256xf32>
    %23 = tpu.matmul %21, %22, %cst_20 {dimension_numbers = #tpu.dot_dimension_numbers<[1], [0], [0], [1], [0, 0, 1, 1], [], []>} : vector<8x256xf32>, vector<256x256xf32>, vector<8x256xf32> -> vector<8x256xf32>
    %c0_21 = arith.constant 0 : index
    %c0_22 = arith.constant 0 : index
    %24 = vector.load %arg9[%c0_21, %c0_22] : memref<1x256xf32, #tpu.memory_space<vmem>>, vector<1x256xf32>
    %25 = vector.broadcast %24 : vector<1x256xf32> to vector<8x256xf32>
    %26 = arith.addf %23, %25 : vector<8x256xf32>
    %cst_23 = arith.constant 0.000000e+00 : f32
    %27 = vector.broadcast %cst_23 : f32 to vector<8x256xf32>
    %28 = arith.maximumf %26, %27 : vector<8x256xf32>
    %c0_24 = arith.constant 0 : index
    %c0_25 = arith.constant 0 : index
    %29 = vector.load %arg10[%c0_24, %c0_25] : memref<256x4xf32, #tpu.memory_space<vmem>>, vector<256x4xf32>
    %cst_26 = arith.constant dense<0.000000e+00> : vector<8x4xf32>
    %30 = tpu.matmul %28, %29, %cst_26 {dimension_numbers = #tpu.dot_dimension_numbers<[1], [0], [0], [1], [0, 0, 1, 1], [], []>} : vector<8x256xf32>, vector<256x4xf32>, vector<8x4xf32> -> vector<8x4xf32>
    %c0_27 = arith.constant 0 : index
    %c0_28 = arith.constant 0 : index
    %31 = vector.load %arg11[%c0_27, %c0_28] : memref<1x4xf32, #tpu.memory_space<vmem>>, vector<1x4xf32>
    %32 = vector.broadcast %31 : vector<1x4xf32> to vector<8x4xf32>
    %33 = arith.addf %30, %32 : vector<8x4xf32>
    %34 = tpu.iota {dimensions = array<i32: 1>} : vector<8x4xi32>
    %c2_i32 = arith.constant 2 : i32
    %35 = vector.broadcast %c2_i32 : i32 to vector<8x4xi32>
    %36 = arith.cmpi sge, %34, %35 : vector<8x4xi32>
    %cst_29 = arith.constant -2.000000e+01 : f32
    %cst_30 = arith.constant 2.000000e+00 : f32
    %37 = vector.broadcast %cst_29 : f32 to vector<8x4xf32>
    %38 = arith.maximumf %37, %33 : vector<8x4xf32>
    %39 = vector.broadcast %cst_30 : f32 to vector<8x4xf32>
    %40 = arith.minimumf %39, %38 : vector<8x4xf32>
    %41 = arith.select %36, %40, %33 : vector<8x4xi1>, vector<8x4xf32>
    %c0_31 = arith.constant 0 : index
    %c0_32 = arith.constant 0 : index
    %42 = vector.load %arg12[%c0_31, %c0_32] : memref<8x4xf32, #tpu.memory_space<vmem>>, vector<8x4xf32>
    tpu.vector_store %arg12[%c0_31, %c0_32], %41 {strides = array<i32>} : memref<8x4xf32, #tpu.memory_space<vmem>>, vector<8x4xf32>,
    return
  }
  func.func @transform_0(%arg0: i32) -> (i32, i32) {
    %c0_i32 = arith.constant 0 : i32
    %c0_i32_0 = arith.constant 0 : i32
    return %arg0, %c0_i32 : i32, i32
  }
  func.func @transform_1(%arg0: i32) -> (i32, i32) {
    %c0_i32 = arith.constant 0 : i32
    %c0_i32_0 = arith.constant 0 : i32
    %c0_i32_1 = arith.constant 0 : i32
    return %c0_i32, %c0_i32_0 : i32, i32
  }
  func.func @transform_2(%arg0: i32) -> (i32, i32) {
    %c0_i32 = arith.constant 0 : i32
    %c0_i32_0 = arith.constant 0 : i32
    %c0_i32_1 = arith.constant 0 : i32
    return %c0_i32, %c0_i32_0 : i32, i32
  }
  func.func @transform_3(%arg0: i32) -> (i32, i32) {
    %c0_i32 = arith.constant 0 : i32
    %c0_i32_0 = arith.constant 0 : i32
    %c0_i32_1 = arith.constant 0 : i32
    return %c0_i32, %c0_i32_0 : i32, i32
  }
  func.func @transform_4(%arg0: i32) -> (i32, i32) {
    %c0_i32 = arith.constant 0 : i32
    %c0_i32_0 = arith.constant 0 : i32
    %c0_i32_1 = arith.constant 0 : i32
    return %c0_i32, %c0_i32_0 : i32, i32
  }
  func.func @transform_5(%arg0: i32) -> (i32, i32) {
    %c0_i32 = arith.constant 0 : i32
    %c0_i32_0 = arith.constant 0 : i32
    %c0_i32_1 = arith.constant 0 : i32
    return %c0_i32, %c0_i32_0 : i32, i32
  }
  func.func @transform_6(%arg0: i32) -> (i32, i32) {
    %c0_i32 = arith.constant 0 : i32
    %c0_i32_0 = arith.constant 0 : i32
    %c0_i32_1 = arith.constant 0 : i32
    return %c0_i32, %c0_i32_0 : i32, i32
  }
  func.func @transform_7(%arg0: i32) -> (i32, i32) {
    %c0_i32 = arith.constant 0 : i32
    %c0_i32_0 = arith.constant 0 : i32
    %c0_i32_1 = arith.constant 0 : i32
    return %c0_i32, %c0_i32_0 : i32, i32
  }
  func.func @transform_8(%arg0: i32) -> (i32, i32) {
    %c0_i32 = arith.constant 0 : i32
    %c0_i32_0 = arith.constant 0 : i32
    %c0_i32_1 = arith.constant 0 : i32
    return %c0_i32, %c0_i32_0 : i32, i32
  }
  func.func @transform_9(%arg0: i32) -> (i32, i32) {
    %c0_i32 = arith.constant 0 : i32
    %c0_i32_0 = arith.constant 0 : i32
    %c0_i32_1 = arith.constant 0 : i32
    return %c0_i32, %c0_i32_0 : i32, i32
  }
  func.func @transform_10(%arg0: i32) -> (i32, i32) {
    %c0_i32 = arith.constant 0 : i32
    %c0_i32_0 = arith.constant 0 : i32
    %c0_i32_1 = arith.constant 0 : i32
    return %c0_i32, %c0_i32_0 : i32, i32
  }
  func.func @transform_11(%arg0: i32) -> (i32, i32) {
    %c0_i32 = arith.constant 0 : i32
    %c0_i32_0 = arith.constant 0 : i32
    return %arg0, %c0_i32 : i32, i32
  }
}

</mosaic_0001>

<bundles_post_ra>
// kernel: actor_high_forward.1
= control target key start
LH: loop header
LB: loop body
LE: loop exit
PB: predicated region body
PF: predicated region fallthrough
CT: control target
= control target key end

     0   :  { %16 = vsyncpa [#allocation3], 0  ;;  %s1060_s0 = inlined_call_operand.vmem [shape: f32[8,8], index: 0, kind: input, shape index: {}]   ;;  %s1061_s1 = inlined_call_operand.vmem [shape: f32[8,256], index: 1, kind: input, shape index: {}]   ;;  %s1062_s2 = inlined_call_operand.vmem [shape: f32[1,256], index: 2, kind: input, shape index: {}]   ;;  %s1063_s3 = inlined_call_operand.hbm [shape: f32[256,256], index: 3, kind: input, shape index: {}]   ;;  %s1064_s4 = inlined_call_operand.vmem [shape: f32[1,256], index: 4, kind: input, shape index: {}]   ;;  %s1065_s5 = inlined_call_operand.hbm [shape: f32[256,256], index: 5, kind: input, shape index: {}]   ;;  %s1066_s6 = inlined_call_operand.vmem [shape: f32[1,256], index: 6, kind: input, shape index: {}]   ;;  %s1067_s7 = inlined_call_operand.hbm [shape: f32[256,256], index: 7, kind: input, shape index: {}]   ;;  %s1068_s8 = inlined_call_operand.vmem [shape: f32[1,256], index: 8, kind: input, shape index: {}]   ;;  %s1069_s9 = inlined_call_operand.vmem [shape: f32[256,4], index: 9, kind: input, shape index: {}]   ;;  %s1070_s10 = inlined_call_operand.vmem [shape: f32[1,4], index: 10, kind: input, shape index: {}]   ;;  %s1071_s11 = inlined_call_operand.vmem [shape: f32[8,4], index: 11, kind: output, shape index: {}]  }
   0x1   :  { %17 = vsyncpa [#allocation5], 0  ;;  %s848_s17 = smov [#allocation4]   ;;  %s849_s19 = smov [#allocation2]  }
   0x2   :  { %s43_s18 = sshll.u32 %s848_s17, 4  ;;  %s29_s20 = sshll.u32 %s849_s19, 4  ;;  %s44_s18 = int_to_ptr.vmem [resolvable:$true] %s43_s18  ;;  %s30_s20 = int_to_ptr.vmem [resolvable:$true] %s29_s20 }
   0x3   :  { %s792_s21 = scalar_lea.vmem %s44_s18, 8192  ;;  %p797_p1 = scmp.lt.s32.totalorder %s44_s18, %s44_s18 }
   0x4   :  { %p793_p0 = scmp.ne.s32.totalorder %s44_s18, %s792_s21  ;;  %p798_p2 = scmp.lt.s32.totalorder %s792_s21, %s792_s21 }
   0x6   :  { %p799_p3 = por %p798_p2, %p797_p1 }
   0x8   :  { %p800_p4 = pnand %p799_p3, %p793_p0 }
   0xa   :  { %803 = shalt.err (!%p800_p4)
}
   0xb   :  { %s850_s22 = smov 256   ;;  %s851_s23 = smov 16  }
   0xc   :  { %49 = dma.hbm_to_vmem [thread:$0]  %s1065_s5, 8192, %s44_s18, [#allocation5], %s850_s22, %s850_s22, %s851_s23  }
   0xd   :  { %s812_s26 = scalar_lea.vmem %s30_s20, 8192  ;;  %p817_p6 = scmp.lt.s32.totalorder %s30_s20, %s30_s20 }
   0xe   :  { %p813_p5 = scmp.ne.s32.totalorder %s30_s20, %s812_s26  ;;  %p818_p7 = scmp.lt.s32.totalorder %s812_s26, %s812_s26 }
  0x10   :  { %p819_p8 = por %p818_p7, %p817_p6 }
  0x12   :  { %p820_p9 = pnand %p819_p8, %p813_p5 }
  0x14   :  { %823 = shalt.err (!%p820_p9)
}
  0x15   :  { %35 = dma.hbm_to_vmem [thread:$0]  %s1063_s3, 8192, %s30_s20, [#allocation3], %s850_s22, %s850_s22, %s851_s23  }
  0x16   :  { %s852_s29 = smov [#allocation6]  }
  0x17   :  { %s57_s30 = sshll.u32 %s852_s29, 4  ;;  %s58_s30 = int_to_ptr.vmem [resolvable:$true] %s57_s30 }
  0x18   :  { %s832_s12 = scalar_lea.vmem %s58_s30, 8192  ;;  %p837_p11 = scmp.lt.s32.totalorder %s58_s30, %s58_s30 }
  0x19   :  { %p833_p10 = scmp.ne.s32.totalorder %s58_s30, %s832_s12  ;;  %p838_p12 = scmp.lt.s32.totalorder %s832_s12, %s832_s12 }
  0x1b   :  { %p839_p13 = por %p838_p12, %p837_p11 }
  0x1d   :  { %p840_p0 = pnand %p839_p13, %p833_p10 }
  0x1f   :  { %843 = shalt.err (!%p840_p0)
}
  0x20   :  { %63 = dma.hbm_to_vmem [thread:$0]  %s1067_s7, 8192, %s58_s30, [#allocation5], %s850_s22, %s850_s22, %s851_s23  }
  0x21   :  { %844 = dma.done.wait [#allocation3], 8192  }
  0x22   :  { %845 = vsyncadd [#allocation3], 4294959104 }
  0x23   :  { %846 = dma.done.wait [#allocation5], 16384  }
  0x24   :  { %847 = vsyncadd [#allocation5], 4294950912  ;;  %v853_v0 = vmov 0.0   ;;  %v81_v1 = vld [vmem:[%s1061_s1 + $0x8] sm:$0xff]  ;;  %v80_v2 = vld [vmem:[%s1061_s1] sm:$0xff]  ;;  %vm94_vm0 = vcmask 64512  }
  0x25   :  { %162 = vmatprep.mubr.f32.mxu0 %v853_v0  ;;  %v79_v3 = vld [vmem:[%s1060_s0] sm:$0xff]  ;;  %128 = vmatprep.subr.mxu0 %v81_v1  ;;  %v202_v4 = vld [vmem:[#allocation2 + $0xf8] sm:$0xff]  ;;  %v201_v5 = vld [vmem:[#allocation2 + $0xf0] sm:$0xff]  ;;  %vm733_vm2 = vcmask 31744  }
  0x26   :  { %v200_v6 = vld [vmem:[#allocation2 + $0xe8] sm:$0xff]  ;;  %129 = vmatpush1.msra.mxu0 %v80_v2  ;;  %247 = vmatprep.subr.mxu1 %v202_v4  ;;  %v199_v7 = vld [vmem:[#allocation2 + $0xe0] sm:$0xff]  ;;  %v198_v8 = vld [vmem:[#allocation2 + $0xd8] sm:$0xff] }
  0x27   :  { %741 = vmatmul.mubr.msk.f32.vlgmr.msra.gmra.mxu0 %vm94_vm0, %v79_v3  ;;  %248 = vmatpush1.msra.mxu1 %v201_v5  ;;  %v197_v9 = vld [vmem:[#allocation2 + $0xd0] sm:$0xff]  ;;  %v196_v10 = vld [vmem:[#allocation2 + $0xc8] sm:$0xff]  ;;  %v195_v11 = vld [vmem:[#allocation2 + $0xc0] sm:$0xff] }
  0x28   :  { %249 = vmatprep.subr.mxu1 %v200_v6  ;;  %v194_v12 = vld [vmem:[#allocation2 + $0xb8] sm:$0xff]  ;;  %v193_v13 = vld [vmem:[#allocation2 + $0xb0] sm:$0xff]  ;;  %v192_v14 = vld [vmem:[#allocation2 + $0xa8] sm:$0xff] }
  0x29   :  { %250 = vmatpush1.msra.mxu1 %v199_v7  ;;  %v191_v15 = vld [vmem:[#allocation2 + $0xa0] sm:$0xff]  ;;  %v190_v16 = vld [vmem:[#allocation2 + $0x98] sm:$0xff]  ;;  %v189_v17 = vld [vmem:[#allocation2 + $0x90] sm:$0xff] }
  0x2a   :  { %251 = vmatprep.subr.mxu1 %v198_v8  ;;  %v188_v18 = vld [vmem:[#allocation2 + $0x88] sm:$0xff]  ;;  %v187_v19 = vld [vmem:[#allocation2 + $0x80] sm:$0xff]  ;;  %v186_v20 = vld [vmem:[#allocation2 + $0x78] sm:$0xff] }
  0x2b   :  { %252 = vmatpush1.msra.mxu1 %v197_v9  ;;  %v185_v21 = vld [vmem:[#allocation2 + $0x70] sm:$0xff]  ;;  %v184_v22 = vld [vmem:[#allocation2 + $0x68] sm:$0xff]  ;;  %v183_v23 = vld [vmem:[#allocation2 + $0x60] sm:$0xff] }
  0x2c   :  { %253 = vmatprep.subr.mxu1 %v196_v10  ;;  %v182_v24 = vld [vmem:[#allocation2 + $0x58] sm:$0xff]  ;;  %v181_v25 = vld [vmem:[#allocation2 + $0x50] sm:$0xff]  ;;  %v180_v26 = vld [vmem:[#allocation2 + $0x48] sm:$0xff] }
  0x2d   :  { %254 = vmatpush1.msra.mxu1 %v195_v11  ;;  %v179_v27 = vld [vmem:[#allocation2 + $0x40] sm:$0xff]  ;;  %v178_v28 = vld [vmem:[#allocation2 + $0x38] sm:$0xff]  ;;  %v177_v29 = vld [vmem:[#allocation2 + $0x30] sm:$0xff] }
  0x2e   :  { %255 = vmatprep.subr.mxu1 %v194_v12  ;;  %v176_v30 = vld [vmem:[#allocation2 + $0x28] sm:$0xff]  ;;  %v175_v31 = vld [vmem:[#allocation2 + $0x20] sm:$0xff]  ;;  %v174_v32 = vld [vmem:[#allocation2 + $0x18] sm:$0xff] }
  0x2f   :  { %256 = vmatpush1.msra.mxu1 %v193_v13  ;;  %v173_v33 = vld [vmem:[#allocation2 + $0x10] sm:$0xff]  ;;  %v172_v34 = vld [vmem:[#allocation2 + $0x8] sm:$0xff]  ;;  %v171_v35 = vld [vmem:[#allocation2] sm:$0xff] }
  0x30   :  { %257 = vmatprep.subr.mxu1 %v192_v14  ;;  %v234_v36 = vld [vmem:[#allocation2 + $0x1f8] sm:$0xff]  ;;  %v233_v37 = vld [vmem:[#allocation2 + $0x1f0] sm:$0xff]  ;;  %v232_v38 = vld [vmem:[#allocation2 + $0x1e8] sm:$0xff] }
  0x31   :  { %258 = vmatpush1.msra.mxu1 %v191_v15  ;;  %v231_v39 = vld [vmem:[#allocation2 + $0x1e0] sm:$0xff]  ;;  %v230_v40 = vld [vmem:[#allocation2 + $0x1d8] sm:$0xff]  ;;  %v229_v41 = vld [vmem:[#allocation2 + $0x1d0] sm:$0xff] }
  0x32   :  { %259 = vmatprep.subr.mxu1 %v190_v16  ;;  %v228_v42 = vld [vmem:[#allocation2 + $0x1c8] sm:$0xff]  ;;  %v227_v43 = vld [vmem:[#allocation2 + $0x1c0] sm:$0xff]  ;;  %v226_v44 = vld [vmem:[#allocation2 + $0x1b8] sm:$0xff] }
  0x33   :  { %260 = vmatpush1.msra.mxu1 %v189_v17  ;;  %v225_v45 = vld [vmem:[#allocation2 + $0x1b0] sm:$0xff]  ;;  %v224_v46 = vld [vmem:[#allocation2 + $0x1a8] sm:$0xff]  ;;  %v223_v47 = vld [vmem:[#allocation2 + $0x1a0] sm:$0xff] }
  0x34   :  { %261 = vmatprep.subr.mxu1 %v188_v18  ;;  %v222_v48 = vld [vmem:[#allocation2 + $0x198] sm:$0xff]  ;;  %v221_v49 = vld [vmem:[#allocation2 + $0x190] sm:$0xff]  ;;  %v220_v50 = vld [vmem:[#allocation2 + $0x188] sm:$0xff] }
  0x35   :  { %262 = vmatpush1.msra.mxu1 %v187_v19  ;;  %v219_v51 = vld [vmem:[#allocation2 + $0x180] sm:$0xff]  ;;  %v218_v52 = vld [vmem:[#allocation2 + $0x178] sm:$0xff]  ;;  %v217_v53 = vld [vmem:[#allocation2 + $0x170] sm:$0xff] }
  0x36   :  { %263 = vmatprep.subr.mxu1 %v186_v20  ;;  %v216_v54 = vld [vmem:[#allocation2 + $0x168] sm:$0xff]  ;;  %v215_v55 = vld [vmem:[#allocation2 + $0x160] sm:$0xff]  ;;  %v214_v56 = vld [vmem:[#allocation2 + $0x158] sm:$0xff] }
  0x37   :  { %264 = vmatpush1.msra.mxu1 %v185_v21  ;;  %v213_v57 = vld [vmem:[#allocation2 + $0x150] sm:$0xff]  ;;  %v212_v58 = vld [vmem:[#allocation2 + $0x148] sm:$0xff]  ;;  %v211_v59 = vld [vmem:[#allocation2 + $0x140] sm:$0xff] }
  0x38   :  { %265 = vmatprep.subr.mxu1 %v184_v22  ;;  %v210_v60 = vld [vmem:[#allocation2 + $0x138] sm:$0xff]  ;;  %v209_v61 = vld [vmem:[#allocation2 + $0x130] sm:$0xff]  ;;  %v208_v62 = vld [vmem:[#allocation2 + $0x128] sm:$0xff] }
  0x39   :  { %266 = vmatpush1.msra.mxu1 %v183_v23  ;;  %v207_v63 = vld [vmem:[#allocation2 + $0x120] sm:$0xff]  ;;  %v206_v0 = vld [vmem:[#allocation2 + $0x118] sm:$0xff]  ;;  %v205_v1 = vld [vmem:[#allocation2 + $0x110] sm:$0xff] }
  0x3a   :  { %267 = vmatprep.subr.mxu1 %v182_v24  ;;  %v204_v2 = vld [vmem:[#allocation2 + $0x108] sm:$0xff]  ;;  %v203_v3 = vld [vmem:[#allocation2 + $0x100] sm:$0xff]  ;;  %v351_v4 = vld [vmem:[#allocation4 + $0xf8] sm:$0xff] }
  0x3b   :  { %268 = vmatpush1.msra.mxu1 %v181_v25  ;;  %v350_v5 = vld [vmem:[#allocation4 + $0xf0] sm:$0xff]  ;;  %v349_v6 = vld [vmem:[#allocation4 + $0xe8] sm:$0xff]  ;;  %396 = vmatprep.subr.mxu0 %v351_v4  ;;  %v348_v7 = vld [vmem:[#allocation4 + $0xe0] sm:$0xff] }
  0x3c   :  { %269 = vmatprep.subr.mxu1 %v180_v26  ;;  %397 = vmatpush1.msra.mxu0 %v350_v5  ;;  %v347_v8 = vld [vmem:[#allocation4 + $0xd8] sm:$0xff]  ;;  %v346_v9 = vld [vmem:[#allocation4 + $0xd0] sm:$0xff]  ;;  %v345_v10 = vld [vmem:[#allocation4 + $0xc8] sm:$0xff] }
  0x3d   :  { %270 = vmatpush1.msra.mxu1 %v179_v27  ;;  %398 = vmatprep.subr.mxu0 %v349_v6  ;;  %v344_v11 = vld [vmem:[#allocation4 + $0xc0] sm:$0xff]  ;;  %v343_v12 = vld [vmem:[#allocation4 + $0xb8] sm:$0xff]  ;;  %v342_v13 = vld [vmem:[#allocation4 + $0xb0] sm:$0xff] }
  0x3e   :  { %271 = vmatprep.subr.mxu1 %v178_v28  ;;  %399 = vmatpush1.msra.mxu0 %v348_v7  ;;  %v341_v14 = vld [vmem:[#allocation4 + $0xa8] sm:$0xff]  ;;  %v340_v15 = vld [vmem:[#allocation4 + $0xa0] sm:$0xff]  ;;  %v339_v16 = vld [vmem:[#allocation4 + $0x98] sm:$0xff] }
  0x3f   :  { %272 = vmatpush1.msra.mxu1 %v177_v29  ;;  %400 = vmatprep.subr.mxu0 %v347_v8  ;;  %v338_v17 = vld [vmem:[#allocation4 + $0x90] sm:$0xff]  ;;  %v337_v18 = vld [vmem:[#allocation4 + $0x88] sm:$0xff]  ;;  %v336_v19 = vld [vmem:[#allocation4 + $0x80] sm:$0xff] }
  0x40   :  { %273 = vmatprep.subr.mxu1 %v176_v30  ;;  %401 = vmatpush1.msra.mxu0 %v346_v9  ;;  %v335_v20 = vld [vmem:[#allocation4 + $0x78] sm:$0xff]  ;;  %v334_v21 = vld [vmem:[#allocation4 + $0x70] sm:$0xff]  ;;  %v333_v22 = vld [vmem:[#allocation4 + $0x68] sm:$0xff] }
  0x41   :  { %274 = vmatpush1.msra.mxu1 %v175_v31  ;;  %402 = vmatprep.subr.mxu0 %v345_v10  ;;  %v332_v23 = vld [vmem:[#allocation4 + $0x60] sm:$0xff]  ;;  %v331_v24 = vld [vmem:[#allocation4 + $0x58] sm:$0xff]  ;;  %v330_v25 = vld [vmem:[#allocation4 + $0x50] sm:$0xff] }
  0x42   :  { %275 = vmatprep.subr.mxu1 %v174_v32  ;;  %403 = vmatpush1.msra.mxu0 %v344_v11  ;;  %v329_v26 = vld [vmem:[#allocation4 + $0x48] sm:$0xff]  ;;  %v328_v27 = vld [vmem:[#allocation4 + $0x40] sm:$0xff]  ;;  %v327_v28 = vld [vmem:[#allocation4 + $0x38] sm:$0xff] }
  0x43   :  { %276 = vmatpush1.msra.mxu1 %v173_v33  ;;  %404 = vmatprep.subr.mxu0 %v343_v12  ;;  %v326_v29 = vld [vmem:[#allocation4 + $0x30] sm:$0xff]  ;;  %v325_v30 = vld [vmem:[#allocation4 + $0x28] sm:$0xff]  ;;  %v324_v31 = vld [vmem:[#allocation4 + $0x20] sm:$0xff] }
  0x44   :  { %277 = vmatprep.subr.mxu1 %v172_v34  ;;  %405 = vmatpush1.msra.mxu0 %v342_v13  ;;  %v323_v32 = vld [vmem:[#allocation4 + $0x18] sm:$0xff]  ;;  %v322_v33 = vld [vmem:[#allocation4 + $0x10] sm:$0xff]  ;;  %v321_v34 = vld [vmem:[#allocation4 + $0x8] sm:$0xff] }
  0x45   :  { %278 = vmatpush1.msra.mxu1 %v171_v35  ;;  %406 = vmatprep.subr.mxu0 %v341_v14  ;;  %v320_v35 = vld [vmem:[#allocation4] sm:$0xff]  ;;  %v359_v9 = vld [vmem:[#allocation4 + $0x138] sm:$0xff]  ;;  %v358_v10 = vld [vmem:[#allocation4 + $0x130] sm:$0xff] }
  0x46   :  { %279 = vmatprep.subr.mxu1 %v234_v36  ;;  %407 = vmatpush1.msra.mxu0 %v340_v15  ;;  %v383_v36 = vld [vmem:[#allocation4 + $0x1f8] sm:$0xff]  ;;  %v357_v11 = vld [vmem:[#allocation4 + $0x128] sm:$0xff]  ;;  %v356_v12 = vld [vmem:[#allocation4 + $0x120] sm:$0xff] }
  0x47   :  { %280 = vmatpush2.msra.mxu1 %v233_v37  ;;  %408 = vmatprep.subr.mxu0 %v339_v16  ;;  %v382_v37 = vld [vmem:[#allocation4 + $0x1f0] sm:$0xff]  ;;  %v355_v13 = vld [vmem:[#allocation4 + $0x118] sm:$0xff]  ;;  %v353_v15 = vld [vmem:[#allocation4 + $0x108] sm:$0xff] }
  0x48   :  { %281 = vmatprep.subr.mxu1 %v232_v38  ;;  %409 = vmatpush1.msra.mxu0 %v338_v17  ;;  %v381_v38 = vld [vmem:[#allocation4 + $0x1e8] sm:$0xff]  ;;  %v354_v14 = vld [vmem:[#allocation4 + $0x110] sm:$0xff]  ;;  %v352_v16 = vld [vmem:[#allocation4 + $0x100] sm:$0xff] }
  0x49   :  { %282 = vmatpush2.msra.mxu1 %v231_v39  ;;  %410 = vmatprep.subr.mxu0 %v337_v18  ;;  %v380_v39 = vld [vmem:[#allocation4 + $0x1e0] sm:$0xff]  ;;  %v500_v17 = vld [vmem:[#allocation6 + $0xf8] sm:$0xff]  ;;  %v499_v18 = vld [vmem:[#allocation6 + $0xf0] sm:$0xff] }
  0x4a   :  { %283 = vmatprep.subr.mxu1 %v230_v40  ;;  %411 = vmatpush1.msra.mxu0 %v336_v19  ;;  %v379_v40 = vld [vmem:[#allocation4 + $0x1d8] sm:$0xff]  ;;  %v498_v19 = vld [vmem:[#allocation6 + $0xe8] sm:$0xff] }
  0x4b   :  { %284 = vmatpush2.msra.mxu1 %v229_v41  ;;  %412 = vmatprep.subr.mxu0 %v335_v20  ;;  %v378_v41 = vld [vmem:[#allocation4 + $0x1d0] sm:$0xff]  ;;  %v497_v20 = vld [vmem:[#allocation6 + $0xe0] sm:$0xff] }
  0x4c   :  { %285 = vmatprep.subr.mxu1 %v228_v42  ;;  %413 = vmatpush1.msra.mxu0 %v334_v21  ;;  %v377_v42 = vld [vmem:[#allocation4 + $0x1c8] sm:$0xff]  ;;  %v496_v21 = vld [vmem:[#allocation6 + $0xd8] sm:$0xff] }
  0x4d   :  { %286 = vmatpush2.msra.mxu1 %v227_v43  ;;  %414 = vmatprep.subr.mxu0 %v333_v22  ;;  %v376_v43 = vld [vmem:[#allocation4 + $0x1c0] sm:$0xff]  ;;  %v495_v22 = vld [vmem:[#allocation6 + $0xd0] sm:$0xff] }
  0x4e   :  { %287 = vmatprep.subr.mxu1 %v226_v44  ;;  %415 = vmatpush1.msra.mxu0 %v332_v23  ;;  %v375_v44 = vld [vmem:[#allocation4 + $0x1b8] sm:$0xff]  ;;  %v494_v23 = vld [vmem:[#allocation6 + $0xc8] sm:$0xff] }
  0x4f   :  { %288 = vmatpush2.msra.mxu1 %v225_v45  ;;  %416 = vmatprep.subr.mxu0 %v331_v24  ;;  %v374_v45 = vld [vmem:[#allocation4 + $0x1b0] sm:$0xff]  ;;  %v493_v24 = vld [vmem:[#allocation6 + $0xc0] sm:$0xff] }
  0x50   :  { %289 = vmatprep.subr.mxu1 %v224_v46  ;;  %417 = vmatpush1.msra.mxu0 %v330_v25  ;;  %v373_v46 = vld [vmem:[#allocation4 + $0x1a8] sm:$0xff]  ;;  %v492_v25 = vld [vmem:[#allocation6 + $0xb8] sm:$0xff] }
  0x51   :  { %290 = vmatpush2.msra.mxu1 %v223_v47  ;;  %418 = vmatprep.subr.mxu0 %v329_v26  ;;  %v372_v47 = vld [vmem:[#allocation4 + $0x1a0] sm:$0xff]  ;;  %v491_v26 = vld [vmem:[#allocation6 + $0xb0] sm:$0xff] }
  0x52   :  { %291 = vmatprep.subr.mxu1 %v222_v48  ;;  %419 = vmatpush1.msra.mxu0 %v328_v27  ;;  %v371_v48 = vld [vmem:[#allocation4 + $0x198] sm:$0xff]  ;;  %v490_v27 = vld [vmem:[#allocation6 + $0xa8] sm:$0xff] }
  0x53   :  { %292 = vmatpush2.msra.mxu1 %v221_v49  ;;  %420 = vmatprep.subr.mxu0 %v327_v28  ;;  %v370_v49 = vld [vmem:[#allocation4 + $0x190] sm:$0xff]  ;;  %v489_v28 = vld [vmem:[#allocation6 + $0xa0] sm:$0xff] }
  0x54   :  { %293 = vmatprep.subr.mxu1 %v220_v50  ;;  %421 = vmatpush1.msra.mxu0 %v326_v29  ;;  %v369_v50 = vld [vmem:[#allocation4 + $0x188] sm:$0xff]  ;;  %v488_v29 = vld [vmem:[#allocation6 + $0x98] sm:$0xff] }
  0x55   :  { %294 = vmatpush2.msra.mxu1 %v219_v51  ;;  %422 = vmatprep.subr.mxu0 %v325_v30  ;;  %v368_v51 = vld [vmem:[#allocation4 + $0x180] sm:$0xff]  ;;  %v487_v30 = vld [vmem:[#allocation6 + $0x90] sm:$0xff] }
  0x56   :  { %295 = vmatprep.subr.mxu1 %v218_v52  ;;  %423 = vmatpush1.msra.mxu0 %v324_v31  ;;  %v367_v52 = vld [vmem:[#allocation4 + $0x178] sm:$0xff]  ;;  %v486_v31 = vld [vmem:[#allocation6 + $0x88] sm:$0xff] }
  0x57   :  { %296 = vmatpush2.msra.mxu1 %v217_v53  ;;  %424 = vmatprep.subr.mxu0 %v323_v32  ;;  %v366_v53 = vld [vmem:[#allocation4 + $0x170] sm:$0xff]  ;;  %v485_v32 = vld [vmem:[#allocation6 + $0x80] sm:$0xff] }
  0x58   :  { %297 = vmatprep.subr.mxu1 %v216_v54  ;;  %425 = vmatpush1.msra.mxu0 %v322_v33  ;;  %v365_v54 = vld [vmem:[#allocation4 + $0x168] sm:$0xff]  ;;  %v484_v33 = vld [vmem:[#allocation6 + $0x78] sm:$0xff] }
  0x59   :  { %298 = vmatpush2.msra.mxu1 %v215_v55  ;;  %426 = vmatprep.subr.mxu0 %v321_v34  ;;  %v364_v55 = vld [vmem:[#allocation4 + $0x160] sm:$0xff]  ;;  %v483_v34 = vld [vmem:[#allocation6 + $0x70] sm:$0xff] }
  0x5a   :  { %299 = vmatprep.subr.mxu1 %v214_v56  ;;  %427 = vmatpush1.msra.mxu0 %v320_v35  ;;  %v363_v56 = vld [vmem:[#allocation4 + $0x158] sm:$0xff]  ;;  %v482_v35 = vld [vmem:[#allocation6 + $0x68] sm:$0xff] }
  0x5b   :  { %300 = vmatpush2.msra.mxu1 %v213_v57  ;;  %428 = vmatprep.subr.mxu0 %v383_v36  ;;  %v362_v57 = vld [vmem:[#allocation4 + $0x150] sm:$0xff]  ;;  %v481_v36 = vld [vmem:[#allocation6 + $0x60] sm:$0xff] }
  0x5c   :  { %301 = vmatprep.subr.mxu1 %v212_v58  ;;  %429 = vmatpush2.msra.mxu0 %v382_v37  ;;  %v361_v58 = vld [vmem:[#allocation4 + $0x148] sm:$0xff]  ;;  %v480_v37 = vld [vmem:[#allocation6 + $0x58] sm:$0xff] }
  0x5d   :  { %302 = vmatpush2.msra.mxu1 %v211_v59  ;;  %430 = vmatprep.subr.mxu0 %v381_v38  ;;  %v360_v59 = vld [vmem:[#allocation4 + $0x140] sm:$0xff]  ;;  %v479_v38 = vld [vmem:[#allocation6 + $0x50] sm:$0xff] }
  0x5e   :  { %303 = vmatprep.subr.mxu1 %v210_v60  ;;  %431 = vmatpush2.msra.mxu0 %v380_v39  ;;  %v84_v60 = vlaneseq  ;;  %v478_v39 = vld [vmem:[#allocation6 + $0x48] sm:$0xff] }
  0x5f   :  { %304 = vmatpush2.msra.mxu1 %v209_v61  ;;  %432 = vmatprep.subr.mxu0 %v379_v40  ;;  %v477_v40 = vld [vmem:[#allocation6 + $0x40] sm:$0xff] }
  0x60   :  { %305 = vmatprep.subr.mxu1 %v208_v62  ;;  %433 = vmatpush2.msra.mxu0 %v378_v41  ;;  %v85_v61 = vshrl.u32 %v84_v60, 7  ;;  %v476_v41 = vld [vmem:[#allocation6 + $0x38] sm:$0xff] }
  0x61   :  { %306 = vmatpush2.msra.mxu1 %v207_v63  ;;  %434 = vmatprep.subr.mxu0 %v377_v42  ;;  %v82_v63 = vld [vmem:[%s1062_s2] sm:$0x3]  ;;  %v475_v42 = vld [vmem:[#allocation6 + $0x30] sm:$0xff] }
  0x62   :  { %307 = vmatprep.subr.mxu1 %v206_v0  ;;  %435 = vmatpush2.msra.mxu0 %v376_v43  ;;  %v933_v62 = vsub.s32 0, %v85_v61  ;;  %v938_v0 = vsub.s32 1, %v85_v61  ;;  %v474_v43 = vld [vmem:[#allocation6 + $0x28] sm:$0xff]  ;;  %v521_v61 = vld [vmem:[#allocation6 + $0x1a0] sm:$0xff] }
  0x63   :  { %308 = vmatpush2.msra.mxu1 %v205_v1  ;;  %436 = vmatprep.subr.mxu0 %v375_v44  ;;  %v473_v44 = vld [vmem:[#allocation6 + $0x20] sm:$0xff] }
  0x64   :  { %309 = vmatprep.subr.mxu1 %v204_v2  ;;  %437 = vmatpush2.msra.mxu0 %v374_v45  ;;  %v87_v1 = vrot.slane %v82_v63, %v933_v62  ;;  %v91_v2 = vrot.slane %v82_v63, %v938_v0  ;;  %v472_v45 = vld [vmem:[#allocation6 + $0x18] sm:$0xff] }
  0x65   :  { %310 = vmatpush2.msra.mxu1 %v203_v3  ;;  %438 = vmatprep.subr.mxu0 %v373_v46  ;;  %v471_v46 = vld [vmem:[#allocation6 + $0x10] sm:$0xff]  ;;  %v520_v63 = vld [vmem:[#allocation6 + $0x198] sm:$0xff] }
  0x66   :  { %439 = vmatpush2.msra.mxu0 %v372_v47  ;;  %545 = vmatprep.subr.mxu1 %v500_v17  ;;  %v470_v47 = vld [vmem:[#allocation6 + $0x8] sm:$0xff] }
  0x67   :  { %440 = vmatprep.subr.mxu0 %v371_v48  ;;  %v469_v48 = vld [vmem:[#allocation6] sm:$0xff] }
  0x68   :  { %441 = vmatpush2.msra.mxu0 %v370_v49  ;;  %v532_v49 = vld [vmem:[#allocation6 + $0x1f8] sm:$0xff] }
  0x69   :  { %442 = vmatprep.subr.mxu0 %v369_v50  ;;  %v531_v50 = vld [vmem:[#allocation6 + $0x1f0] sm:$0xff] }
  0x6a   :  { %443 = vmatpush2.msra.mxu0 %v368_v51  ;;  %v530_v51 = vld [vmem:[#allocation6 + $0x1e8] sm:$0xff] }
  0x6b   :  { %444 = vmatprep.subr.mxu0 %v367_v52  ;;  %v529_v52 = vld [vmem:[#allocation6 + $0x1e0] sm:$0xff] }
  0x6c   :  { %445 = vmatpush2.msra.mxu0 %v366_v53  ;;  %v528_v53 = vld [vmem:[#allocation6 + $0x1d8] sm:$0xff] }
  0x6d   :  { %446 = vmatprep.subr.mxu0 %v365_v54  ;;  %v527_v54 = vld [vmem:[#allocation6 + $0x1d0] sm:$0xff] }
  0x6e   :  { %447 = vmatpush2.msra.mxu0 %v364_v55  ;;  %v526_v55 = vld [vmem:[#allocation6 + $0x1c8] sm:$0xff] }
  0x6f   :  { %448 = vmatprep.subr.mxu0 %v363_v56  ;;  %v525_v56 = vld [vmem:[#allocation6 + $0x1c0] sm:$0xff] }
  0x70   :  { %449 = vmatpush2.msra.mxu0 %v362_v57  ;;  %v524_v57 = vld [vmem:[#allocation6 + $0x1b8] sm:$0xff] }
  0x71   :  { %450 = vmatprep.subr.mxu0 %v361_v58  ;;  %v523_v58 = vld [vmem:[#allocation6 + $0x1b0] sm:$0xff] }
  0x72   :  { %451 = vmatpush2.msra.mxu0 %v360_v59  ;;  %v522_v59 = vld [vmem:[#allocation6 + $0x1a8] sm:$0xff] }
  0x73   :  { %452 = vmatprep.subr.mxu0 %v359_v9  ;;  %v511_v9 = vld [vmem:[#allocation6 + $0x150] sm:$0xff] }
  0x74   :  { %453 = vmatpush2.msra.mxu0 %v358_v10  ;;  %v510_v10 = vld [vmem:[#allocation6 + $0x148] sm:$0xff] }
  0x75   :  { %454 = vmatprep.subr.mxu0 %v357_v11  ;;  %v509_v11 = vld [vmem:[#allocation6 + $0x140] sm:$0xff] }
  0x76   :  { %455 = vmatpush2.msra.mxu0 %v356_v12  ;;  %v235_v12 = vld [vmem:[%s1064_s4] sm:$0x3] }
  0x77   :  { %456 = vmatprep.subr.mxu0 %v355_v13  ;;  %v240_v13 = vrot.slane %v235_v12, %v933_v62 }
  0x78   :  { %457 = vmatpush2.msra.mxu0 %v354_v14  ;;  %v244_v14 = vrot.slane %v235_v12, %v938_v0 }
  0x79   :  { %458 = vmatprep.subr.mxu0 %v353_v15 }
  0x7a   :  { %459 = vmatpush2.msra.mxu0 %v352_v16 }
  0xe7   :  { %v164_v3 = vpop.f32.mrf.mxu0 }
  0xe8   :  { %v165_v4 = vadd.f32 %v164_v3, %v87_v1  ;;  %v519_v1 = vld [vmem:[#allocation6 + $0x190] sm:$0xff]  ;;  %v517_v3 = vld [vmem:[#allocation6 + $0x180] sm:$0xff] }
  0xe9   :  { %v166_v5 = vpop.f32.mrf.mxu0 }
  0xea   :  { %v167_v6 = vadd.f32 %v166_v5, %v91_v2  ;;  %v169_v8 = vmax.f32 %v165_v4, 0.0  ;;  %v518_v2 = vld [vmem:[#allocation6 + $0x188] sm:$0xff]  ;;  %v516_v4 = vld [vmem:[#allocation6 + $0x178] sm:$0xff]  ;;  %v515_v5 = vld [vmem:[#allocation6 + $0x170] sm:$0xff] }
  0xec   :  { %v170_v7 = vmax.f32 %v167_v6, 0.0  ;;  %v514_v6 = vld [vmem:[#allocation6 + $0x168] sm:$0xff] }
  0xee   :  { %311 = vmatprep.mubr.f32.mxu1 %v170_v7  ;;  %v513_v7 = vld [vmem:[#allocation6 + $0x160] sm:$0xff] }
  0xef   :  { %312 = vmatmul.mubr.f32.vlgmr.msra.gmra.mxu1 %v169_v8  ;;  %v512_v8 = vld [vmem:[#allocation6 + $0x158] sm:$0xff] }
  0xf0   :  { %546 = vmatpush1.msra.mxu1 %v499_v18 }
  0xf1   :  { %547 = vmatprep.subr.mxu1 %v498_v19 }
  0xf2   :  { %548 = vmatpush1.msra.mxu1 %v497_v20 }
  0xf3   :  { %549 = vmatprep.subr.mxu1 %v496_v21  ;;  %v508_v21 = vld [vmem:[#allocation6 + $0x138] sm:$0xff] }
  0xf4   :  { %550 = vmatpush1.msra.mxu1 %v495_v22  ;;  %v507_v22 = vld [vmem:[#allocation6 + $0x130] sm:$0xff] }
  0xf5   :  { %551 = vmatprep.subr.mxu1 %v494_v23  ;;  %v506_v23 = vld [vmem:[#allocation6 + $0x128] sm:$0xff] }
  0xf6   :  { %552 = vmatpush1.msra.mxu1 %v493_v24  ;;  %v505_v24 = vld [vmem:[#allocation6 + $0x120] sm:$0xff] }
  0xf7   :  { %553 = vmatprep.subr.mxu1 %v492_v25  ;;  %v504_v25 = vld [vmem:[#allocation6 + $0x118] sm:$0xff] }
  0xf8   :  { %554 = vmatpush1.msra.mxu1 %v491_v26  ;;  %v503_v26 = vld [vmem:[#allocation6 + $0x110] sm:$0xff] }
  0xf9   :  { %555 = vmatprep.subr.mxu1 %v490_v27  ;;  %v502_v27 = vld [vmem:[#allocation6 + $0x108] sm:$0xff] }
  0xfa   :  { %556 = vmatpush1.msra.mxu1 %v489_v28  ;;  %v501_v28 = vld [vmem:[#allocation6 + $0x100] sm:$0xff] }
  0xfb   :  { %557 = vmatprep.subr.mxu1 %v488_v29  ;;  %v649_v29 = vld [vmem:[%s1069_s9 + $0xf8] sm:$0xff] }
  0xfc   :  { %558 = vmatpush1.msra.mxu1 %v487_v30  ;;  %v633_v30 = vld [vmem:[%s1069_s9 + $0x78] sm:$0xff]  ;;  %743 = vmatprep.subr.mxu0 %v649_v29 }
  0xfd   :  { %559 = vmatprep.subr.mxu1 %v486_v31  ;;  %v648_v31 = vld [vmem:[%s1069_s9 + $0xf0] sm:$0xff] }
  0xfe   :  { %560 = vmatpush1.msra.mxu1 %v485_v32  ;;  %v632_v32 = vld [vmem:[%s1069_s9 + $0x70] sm:$0xff] }
  0xff   :  { %561 = vmatprep.subr.mxu1 %v484_v33  ;;  %v647_v33 = vld [vmem:[%s1069_s9 + $0xe8] sm:$0xff] }
 0x100   :  { %562 = vmatpush1.msra.mxu1 %v483_v34  ;;  %v631_v34 = vld [vmem:[%s1069_s9 + $0x68] sm:$0xff] }
 0x101   :  { %563 = vmatprep.subr.mxu1 %v482_v35  ;;  %v646_v35 = vld [vmem:[%s1069_s9 + $0xe0] sm:$0xff] }
 0x102   :  { %564 = vmatpush1.msra.mxu1 %v481_v36  ;;  %v630_v36 = vld [vmem:[%s1069_s9 + $0x60] sm:$0xff] }
 0x103   :  { %565 = vmatprep.subr.mxu1 %v480_v37  ;;  %v645_v37 = vld [vmem:[%s1069_s9 + $0xd8] sm:$0xff] }
 0x104   :  { %566 = vmatpush1.msra.mxu1 %v479_v38  ;;  %v629_v38 = vld [vmem:[%s1069_s9 + $0x58] sm:$0xff] }
 0x105   :  { %567 = vmatprep.subr.mxu1 %v478_v39  ;;  %v644_v39 = vld [vmem:[%s1069_s9 + $0xd0] sm:$0xff] }
 0x106   :  { %568 = vmatpush1.msra.mxu1 %v477_v40  ;;  %v628_v40 = vld [vmem:[%s1069_s9 + $0x50] sm:$0xff] }
 0x107   :  { %569 = vmatprep.subr.mxu1 %v476_v41  ;;  %v643_v41 = vld [vmem:[%s1069_s9 + $0xc8] sm:$0xff] }
 0x108   :  { %570 = vmatpush1.msra.mxu1 %v475_v42  ;;  %v627_v42 = vld [vmem:[%s1069_s9 + $0x48] sm:$0xff] }
 0x109   :  { %571 = vmatprep.subr.mxu1 %v474_v43  ;;  %v642_v43 = vld [vmem:[%s1069_s9 + $0xc0] sm:$0xff] }
 0x10a   :  { %572 = vmatpush1.msra.mxu1 %v473_v44  ;;  %v626_v44 = vld [vmem:[%s1069_s9 + $0x40] sm:$0xff] }
 0x10b   :  { %573 = vmatprep.subr.mxu1 %v472_v45  ;;  %v641_v45 = vld [vmem:[%s1069_s9 + $0xb8] sm:$0xff] }
 0x10c   :  { %574 = vmatpush1.msra.mxu1 %v471_v46  ;;  %v625_v46 = vld [vmem:[%s1069_s9 + $0x38] sm:$0xff] }
 0x10d   :  { %575 = vmatprep.subr.mxu1 %v470_v47  ;;  %v640_v47 = vld [vmem:[%s1069_s9 + $0xb0] sm:$0xff] }
 0x10e   :  { %576 = vmatpush1.msra.mxu1 %v469_v48  ;;  %v624_v48 = vld [vmem:[%s1069_s9 + $0x30] sm:$0xff] }
 0x10f   :  { %577 = vmatprep.subr.mxu1 %v532_v49  ;;  %v639_v49 = vld [vmem:[%s1069_s9 + $0xa8] sm:$0xff] }
 0x110   :  { %578 = vmatpush2.msra.mxu1 %v531_v50  ;;  %v623_v50 = vld [vmem:[%s1069_s9 + $0x28] sm:$0xff] }
 0x111   :  { %579 = vmatprep.subr.mxu1 %v530_v51  ;;  %v638_v51 = vld [vmem:[%s1069_s9 + $0xa0] sm:$0xff] }
 0x112   :  { %580 = vmatpush2.msra.mxu1 %v529_v52  ;;  %v622_v52 = vld [vmem:[%s1069_s9 + $0x20] sm:$0xff] }
 0x113   :  { %581 = vmatprep.subr.mxu1 %v528_v53  ;;  %v384_v53 = vld [vmem:[%s1066_s6] sm:$0x3] }
 0x114   :  { %582 = vmatpush2.msra.mxu1 %v527_v54  ;;  %v389_v54 = vrot.slane %v384_v53, %v933_v62 }
 0x115   :  { %583 = vmatprep.subr.mxu1 %v526_v55  ;;  %v393_v55 = vrot.slane %v384_v53, %v938_v0 }
 0x116   :  { %584 = vmatpush2.msra.mxu1 %v525_v56 }
 0x117   :  { %585 = vmatprep.subr.mxu1 %v524_v57 }
 0x118   :  { %586 = vmatpush2.msra.mxu1 %v523_v58 }
 0x119   :  { %587 = vmatprep.subr.mxu1 %v522_v59 }
 0x11a   :  { %588 = vmatpush2.msra.mxu1 %v521_v61 }
 0x11b   :  { %589 = vmatprep.subr.mxu1 %v520_v63 }
 0x11c   :  { %590 = vmatpush2.msra.mxu1 %v519_v1  ;;  %v637_v1 = vld [vmem:[%s1069_s9 + $0x98] sm:$0xff] }
 0x11d   :  { %591 = vmatprep.subr.mxu1 %v518_v2  ;;  %v621_v2 = vld [vmem:[%s1069_s9 + $0x18] sm:$0xff] }
 0x11e   :  { %592 = vmatpush2.msra.mxu1 %v517_v3  ;;  %v636_v3 = vld [vmem:[%s1069_s9 + $0x90] sm:$0xff] }
 0x11f   :  { %593 = vmatprep.subr.mxu1 %v516_v4  ;;  %v620_v4 = vld [vmem:[%s1069_s9 + $0x10] sm:$0xff] }
 0x120   :  { %594 = vmatpush2.msra.mxu1 %v515_v5  ;;  %v635_v5 = vld [vmem:[%s1069_s9 + $0x88] sm:$0xff] }
 0x121   :  { %595 = vmatprep.subr.mxu1 %v514_v6  ;;  %v619_v6 = vld [vmem:[%s1069_s9 + $0x8] sm:$0xff] }
 0x122   :  { %596 = vmatpush2.msra.mxu1 %v513_v7  ;;  %v634_v7 = vld [vmem:[%s1069_s9 + $0x80] sm:$0xff] }
 0x123   :  { %597 = vmatprep.subr.mxu1 %v512_v8  ;;  %v618_v8 = vld [vmem:[%s1069_s9] sm:$0xff] }
 0x124   :  { %598 = vmatpush2.msra.mxu1 %v511_v9  ;;  %v533_v9 = vld [vmem:[%s1068_s8] sm:$0x3] }
 0x125   :  { %599 = vmatprep.subr.mxu1 %v510_v10  ;;  %v538_v10 = vrot.slane %v533_v9, %v933_v62 }
 0x126   :  { %600 = vmatpush2.msra.mxu1 %v509_v11  ;;  %v542_v11 = vrot.slane %v533_v9, %v938_v0 }
 0x127   :  { %601 = vmatprep.subr.mxu1 %v508_v21 }
 0x128   :  { %602 = vmatpush2.msra.mxu1 %v507_v22  ;;  %v728_v22 = vand.u32 127, %v84_v60 }
 0x129   :  { %603 = vmatprep.subr.mxu1 %v506_v23 }
 0x12a   :  { %604 = vmatpush2.msra.mxu1 %v505_v24  ;;  %vm729_vm1 = vcmp.ge.s32.totalorder %v728_v22, 2 }
 0x12b   :  { %605 = vmatprep.subr.mxu1 %v504_v25 }
 0x12c   :  { %606 = vmatpush2.msra.mxu1 %v503_v26 }
 0x12d   :  { %607 = vmatprep.subr.mxu1 %v502_v27 }
 0x12e   :  { %608 = vmatpush2.msra.mxu1 %v501_v28 }
 0x1af   :  { %v313_v15 = vpop.f32.mrf.mxu1 }
 0x1b0   :  { %v314_v16 = vadd.f32 %v313_v15, %v240_v13 }
 0x1b1   :  { %v315_v17 = vpop.f32.mrf.mxu1 }
 0x1b2   :  { %v316_v18 = vadd.f32 %v315_v17, %v244_v14  ;;  %v318_v20 = vmax.f32 %v314_v16, 0.0 }
 0x1b4   :  { %v319_v19 = vmax.f32 %v316_v18, 0.0 }
 0x1b6   :  { %460 = vmatprep.mubr.f32.mxu0 %v319_v19  ;;  %v742_v19 = vld [vmem:[%s1070_s10] ss:$0 sm:$0xff] }
 0x1b7   :  { %461 = vmatmul.mubr.f32.vlgmr.msra.gmra.mxu0 %v318_v20 }
 0x1b8   :  { %744 = vmatpush3.msra.mxu0 %v633_v30 }
 0x1b9   :  { %745 = vmatprep.subr.mxu0 %v648_v31 }
 0x1ba   :  { %746 = vmatpush3.msra.mxu0 %v632_v32 }
 0x1bb   :  { %747 = vmatprep.subr.mxu0 %v647_v33 }
 0x1bc   :  { %748 = vmatpush3.msra.mxu0 %v631_v34 }
 0x1bd   :  { %749 = vmatprep.subr.mxu0 %v646_v35 }
 0x1be   :  { %750 = vmatpush3.msra.mxu0 %v630_v36 }
 0x1bf   :  { %751 = vmatprep.subr.mxu0 %v645_v37 }
 0x1c0   :  { %752 = vmatpush3.msra.mxu0 %v629_v38 }
 0x1c1   :  { %753 = vmatprep.subr.mxu0 %v644_v39 }
 0x1c2   :  { %754 = vmatpush3.msra.mxu0 %v628_v40 }
 0x1c3   :  { %755 = vmatprep.subr.mxu0 %v643_v41 }
 0x1c4   :  { %756 = vmatpush3.msra.mxu0 %v627_v42 }
 0x1c5   :  { %757 = vmatprep.subr.mxu0 %v642_v43 }
 0x1c6   :  { %758 = vmatpush3.msra.mxu0 %v626_v44 }
 0x1c7   :  { %759 = vmatprep.subr.mxu0 %v641_v45 }
 0x1c8   :  { %760 = vmatpush3.msra.mxu0 %v625_v46 }
 0x1c9   :  { %761 = vmatprep.subr.mxu0 %v640_v47 }
 0x1ca   :  { %762 = vmatpush3.msra.mxu0 %v624_v48 }
 0x1cb   :  { %763 = vmatprep.subr.mxu0 %v639_v49 }
 0x1cc   :  { %764 = vmatpush3.msra.mxu0 %v623_v50 }
 0x1cd   :  { %765 = vmatprep.subr.mxu0 %v638_v51 }
 0x1ce   :  { %766 = vmatpush3.msra.mxu0 %v622_v52 }
 0x1cf   :  { %767 = vmatprep.subr.mxu0 %v637_v1 }
 0x1d0   :  { %768 = vmatpush3.msra.mxu0 %v621_v2 }
 0x1d1   :  { %769 = vmatprep.subr.mxu0 %v636_v3 }
 0x1d2   :  { %770 = vmatpush3.msra.mxu0 %v620_v4 }
 0x1d3   :  { %771 = vmatprep.subr.mxu0 %v635_v5 }
 0x1d4   :  { %772 = vmatpush3.msra.mxu0 %v619_v6 }
 0x1d5   :  { %773 = vmatprep.subr.mxu0 %v634_v7 }
 0x1d6   :  { %774 = vmatpush3.msra.mxu0 %v618_v8 }
 0x277   :  { %v462_v56 = vpop.f32.mrf.mxu0 }
 0x278   :  { %v463_v57 = vadd.f32 %v462_v56, %v389_v54 }
 0x279   :  { %v464_v58 = vpop.f32.mrf.mxu0 }
 0x27a   :  { %v465_v59 = vadd.f32 %v464_v58, %v393_v55  ;;  %v467_v63 = vmax.f32 %v463_v57, 0.0 }
 0x27c   :  { %v468_v61 = vmax.f32 %v465_v59, 0.0 }
 0x27e   :  { %609 = vmatprep.mubr.f32.mxu1 %v468_v61 }
 0x27f   :  { %610 = vmatmul.mubr.f32.vlgmr.msra.gmra.mxu1 %v467_v63 }
 0x33f   :  { %v611_v12 = vpop.f32.mrf.mxu1 }
 0x340   :  { %v612_v13 = vadd.f32 %v611_v12, %v538_v10 }
 0x341   :  { %v613_v14 = vpop.f32.mrf.mxu1 }
 0x342   :  { %v614_v15 = vadd.f32 %v613_v14, %v542_v11  ;;  %v616_v17 = vmax.f32 %v612_v13, 0.0 }
 0x344   :  { %v617_v16 = vmax.f32 %v614_v15, 0.0 }
 0x346   :  { %721 = vmatprep.mubr.f32.mxu0 %v617_v16 }
 0x347   :  { %722 = vmatmul.mubr.f32.vlgmr.msra.gmra.mxu0 %v616_v17 }
 0x407   :  { %v775_v18 = vpop.f32.mrf.mxu0 }
 0x409   :  { %v776_v20 = vpop.f32.mrf.mxu0 }
 0x40a   :  { %v777_v21 = vadd.f32 %v776_v20, %v775_v18 }
 0x40c   :  { %v724_v62 = vadd.f32 %v777_v21, %v742_v19 }
 0x40e   :  { %v730_v23 = vmax.f32 %v724_v62, -20.0 }
 0x410   :  { %v731_v0 = vmin.f32 %v730_v23, 2.0 }
 0x412   :  { %v732_v24 = vsel %vm729_vm1, %v731_v0, %v724_v62 }
 0x413   :  { %734 = vst.msk [vmem:[%s1071_s11] sm:$0xff] %vm733_vm2, %v732_v24 }
 0x414   :  { %739 = vsyncpa [#allocation3], 1 }
 0x415   :  { %740 = vsyncpa [#allocation5], 1 }

</bundles_post_ra>
